<compile_context>
chip_gen: v7x
topology: tpu7x:2x2x1
jax: 0.10.0
libtpu: 0.0.40
codegen_flags: <defaults>
</compile_context>

<pallas_src>
from functools import lru_cache, partial

import jax
import jax.numpy as jnp
from jax.experimental import pallas as pl
from jax.experimental.pallas import tpu as pltpu

_LANE = 128
_INT32_MAX = jnp.iinfo(jnp.int32).max


def _max_argmax_kernel(x_ref, scores_ref, classes_ref, *, lane_dense):
    """Per-row max + first-occurrence argmax over the class (lane) axis."""
    x = x_ref[...]                                            # (TR, C)
    tr = x.shape[0]

    m = jnp.max(x, axis=1, keepdims=True)                     # (TR, 1)
    idx = jax.lax.broadcasted_iota(jnp.int32, x.shape, 1)     # (TR, C)
    # First-occurrence argmax (matches torch.max tie-breaking).  If a row
    # holds NaN, jnp.max gives NaN and (x == m) is all-false; include isnan so
    # the class index points at the first NaN instead of INT32_MAX.
    if jnp.issubdtype(x.dtype, jnp.floating):
        hit = (x == m) | jnp.isnan(x)
    else:
        hit = x == m
    amax = jnp.min(jnp.where(hit, idx, _INT32_MAX), axis=1, keepdims=True)

    if lane_dense:
        # Relayout the (TR, 1) columns into (1, TR) rows: unmasked 128-lane
        # stores + a dense (1, TR) output DMA per tile.  No intermediate f32
        # cast of the scores (review item #5).
        scores_ref[...] = m.reshape(1, tr).astype(scores_ref.dtype)
        classes_ref[...] = amax.reshape(1, tr).astype(jnp.float32)
    else:
        # Fallback layout: width-1 column outputs (masked stores, always lowers).
        scores_ref[...] = m.astype(scores_ref.dtype)
        classes_ref[...] = amax.astype(jnp.float32)


def _run_kernel(x2d, *, score_dtype, tile, num_tiles, r_pad, lane_dense):
    R, C = x2d.shape
    if lane_dense:
        out_shape = (jax.ShapeDtypeStruct((1, r_pad), score_dtype),
                     jax.ShapeDtypeStruct((1, r_pad), jnp.float32))
        out_specs = (pl.BlockSpec((1, tile), lambda i: (0, i)),
                     pl.BlockSpec((1, tile), lambda i: (0, i)))
    else:
        out_shape = (jax.ShapeDtypeStruct((r_pad, 1), score_dtype),
                     jax.ShapeDtypeStruct((r_pad, 1), jnp.float32))
        out_specs = (pl.BlockSpec((tile, 1), lambda i: (i, 0)),
                     pl.BlockSpec((tile, 1), lambda i: (i, 0)))

    return pl.pallas_call(
        partial(_max_argmax_kernel, lane_dense=lane_dense),
        out_shape=out_shape,
        grid=(num_tiles,),
        # The [R, C] input is NOT padded: the last block may extend past row
        # R-1 (masked partial read, unspecified values); those rows' results
        # are sliced off in the wrapper.
        # (v5e: if a trace shows exposed input DMA, add
        #  pipeline_mode=pl.Buffered(3) to this spec.)
        in_specs=[pl.BlockSpec((tile, C), lambda i: (i, 0))],
        out_specs=out_specs,
        compiler_params=pltpu.CompilerParams(
            # "parallel" lets v7x shard the tile axis over its 2 TensorCores
            # (no-op on single-TC v5e/v6e).  If a v7x trace shows a single-TC
            # run, switch to pltpu.CORE_PARALLEL.
            dimension_semantics=("parallel",),
            vmem_limit_bytes=32 * 1024 * 1024,   # lifts v5e's 16 MiB default
        ),
    )(x2d)


@lru_cache(maxsize=None)
def _lane_dense_lowers(r, c, dtype_name, tile, num_tiles, r_pad):
    """Cached AOT lower+compile probe: does the (TR,1)->(1,TR) relayout used
    by the lane-dense output path lower on this toolchain?  Static selection,
    so the choice also holds when deepstream_output is called under an
    enclosing jax.jit (a runtime try/except would not catch XLA-compile-time
    Mosaic errors there)."""
    try:
        dt = jnp.dtype(dtype_name)
        x = jax.ShapeDtypeStruct((r, c), dt)
        jax.jit(partial(_run_kernel, score_dtype=dt, tile=tile,
                        num_tiles=num_tiles, r_pad=r_pad,
                        lane_dense=True)).lower(x).compile()
        return True
    except Exception:
        return False


def deepstream_output(cls_preds, boxes, *, tile_rows=4096,
                      vmem_budget_bytes=24 * 1024 * 1024):
    """cls_preds: [B, N, C]; boxes: [B, N, 4] -> (boxes, scores, classes)."""
    B, N, C = cls_preds.shape
    R = B * N
    itemsize = jnp.dtype(cls_preds.dtype).itemsize

    # Row tile: multiple of 128 (lane-dense output slabs), capped so the
    # double-buffered input block (C padded to 128 lanes in VMEM) stays within
    # the budget on every generation.
    c_lanes = pl.cdiv(C, _LANE) * _LANE
    max_tile = max(_LANE,
                   (vmem_budget_bytes // (2 * c_lanes * itemsize)) // _LANE * _LANE)
    tile = max(_LANE, (tile_rows // _LANE) * _LANE)
    tile = min(tile, max_tile)

    if R <= tile:
        # Single tile covering the whole array: block dims equal the full
        # array dims (legal for any R), no padding or partial blocks at all.
        tile = R
        num_tiles = 1
    else:
        num_tiles = pl.cdiv(R, tile)
        if num_tiles % 2 == 1:
            # Rebalance so v7x's two TensorCores get an equal tile count
            # (e.g. R=8400: 3x4096 -> 4x2176).  No effect on v5e/v6e.
            tile_even = max(_LANE, pl.cdiv(pl.cdiv(R, num_tiles + 1), _LANE) * _LANE)
            if pl.cdiv(R, tile_even) % 2 == 0:
                tile = tile_even
                num_tiles = pl.cdiv(R, tile)
    # Only the tiny (1, r_pad) OUTPUTS are over-allocated; the [R, C] input is
    # never padded or copied.
    r_pad = num_tiles * tile

    x2d = cls_preds.reshape(R, C)        # free: contiguous row-major view

    lane_dense = _lane_dense_lowers(R, C, jnp.dtype(cls_preds.dtype).name,
                                    tile, num_tiles, r_pad)
    scores2d, classes2d = _run_kernel(
        x2d, score_dtype=cls_preds.dtype, tile=tile, num_tiles=num_tiles,
        r_pad=r_pad, lane_dense=lane_dense)

    # The last tile may have read rows >= R (unspecified values); their
    # results land in [R, r_pad) and MUST be sliced off here before the
    # (B, N, 1) reshape.
    scores = scores2d.reshape(r_pad)[:R].reshape(B, N, 1)
    classes = classes2d.reshape(r_pad)[:R].reshape(B, N, 1)
    # boxes = x[1] is a pure pass-through.
    return boxes, scores, classes


if __name__ == "__main__":
    key = jax.random.PRNGKey(0)
    k0, k1 = jax.random.split(key)

    B, N, C = 2, 16, 8          # batch, num_anchors, num_classes
    cls_preds = jax.random.normal(k0, (B, N, C), dtype=jnp.float32)
    boxes = jax.random.normal(k1, (B, N, 4), dtype=jnp.float32)

    out_boxes, out_scores, out_classes = deepstream_output(cls_preds, boxes)
    jax.block_until_ready((out_boxes, out_scores, out_classes))

    # Reference check (pure JAX, mirrors torch.max(x, 2, keepdim=True)).
    ref_scores = jnp.max(cls_preds, axis=2, keepdims=True)
    ref_classes = jnp.argmax(cls_preds, axis=2, keepdims=True).astype(jnp.float32)
    assert out_boxes.shape == (B, N, 4)
    assert out_scores.shape == (B, N, 1) and out_scores.dtype == cls_preds.dtype
    assert out_classes.shape == (B, N, 1) and out_classes.dtype == jnp.float32
    assert jnp.allclose(out_boxes, boxes)
    assert jnp.allclose(out_scores, ref_scores)
    assert jnp.allclose(out_classes, ref_classes)

    print("KERNEL_OK")
</pallas_src>

<mosaic_0001>
module attributes {stable_mosaic.version = 11 : i64} {
  func.func @_max_argmax_kernel(%arg0: i32, %arg1: memref<32x8xf32, #tpu.memory_space<vmem>>, %arg2: memref<32x1xf32, #tpu.memory_space<vmem>>, %arg3: memref<32x1xf32, #tpu.memory_space<vmem>>) attributes {dimension_semantics = [#tpu.dimension_semantics<parallel>], iteration_bounds = array<i64: 1>, scalar_prefetch = 0 : i64, scratch_operands = 0 : i64, tpu.core_type = #tpu.core_type<tc>, window_params = [{transform_indices = @transform_0, window_bounds = array<i64: 32, 8>}, {transform_indices = @transform_1, window_bounds = array<i64: 32, 1>}, {transform_indices = @transform_2, window_bounds = array<i64: 32, 1>}]} {
    %c0 = arith.constant 0 : index
    %c0_0 = arith.constant 0 : index
    %0 = vector.load %arg1[%c0, %c0_0] : memref<32x8xf32, #tpu.memory_space<vmem>>, vector<32x8xf32>
    %cst = arith.constant dense<0xFF800000> : vector<32xf32>
    %1 = vector.multi_reduction <maximumf>, %0, %cst [1] : vector<32x8xf32> to vector<32xf32>
    %2 = vector.shape_cast %1 : vector<32xf32> to vector<32x1xf32>
    %3 = tpu.iota {dimensions = array<i32: 1>} : vector<32x8xi32>
    %4 = vector.broadcast %2 : vector<32x1xf32> to vector<32x8xf32>
    %5 = arith.cmpf oeq, %0, %4 : vector<32x8xf32>
    %6 = arith.cmpf one, %0, %0 : vector<32x8xf32>
    %7 = arith.ori %5, %6 : vector<32x8xi1>
    %c2147483647_i32 = arith.constant 2147483647 : i32
    %8 = vector.broadcast %c2147483647_i32 : i32 to vector<32x8xi32>
    %9 = arith.select %7, %3, %8 : vector<32x8xi1>, vector<32x8xi32>
    %cst_1 = arith.constant dense<2147483647> : vector<32xi32>
    %10 = vector.multi_reduction <minsi>, %9, %cst_1 [1] : vector<32x8xi32> to vector<32xi32>
    %11 = vector.shape_cast %10 : vector<32xi32> to vector<32x1xi32>
    %c0_2 = arith.constant 0 : index
    %c0_3 = arith.constant 0 : index
    %12 = vector.load %arg2[%c0_2, %c0_3] : memref<32x1xf32, #tpu.memory_space<vmem>>, vector<32x1xf32>
    tpu.vector_store %arg2[%c0_2, %c0_3], %2 {strides = array<i32>} : memref<32x1xf32, #tpu.memory_space<vmem>>, vector<32x1xf32>,
    %13 = arith.sitofp %11 : vector<32x1xi32> to vector<32x1xf32>
    %c0_4 = arith.constant 0 : index
    %c0_5 = arith.constant 0 : index
    %14 = vector.load %arg3[%c0_4, %c0_5] : memref<32x1xf32, #tpu.memory_space<vmem>>, vector<32x1xf32>
    tpu.vector_store %arg3[%c0_4, %c0_5], %13 {strides = array<i32>} : memref<32x1xf32, #tpu.memory_space<vmem>>, vector<32x1xf32>,
    return
  }
  func.func @transform_0(%arg0: i32) -> (i32, i32) {
    %c0_i32 = arith.constant 0 : i32
    %c0_i32_0 = arith.constant 0 : i32
    return %arg0, %c0_i32 : i32, i32
  }
  func.func @transform_1(%arg0: i32) -> (i32, i32) {
    %c0_i32 = arith.constant 0 : i32
    %c0_i32_0 = arith.constant 0 : i32
    return %arg0, %c0_i32 : i32, i32
  }
  func.func @transform_2(%arg0: i32) -> (i32, i32) {
    %c0_i32 = arith.constant 0 : i32
    %c0_i32_0 = arith.constant 0 : i32
    return %arg0, %c0_i32 : i32, i32
  }
}

</mosaic_0001>

<bundles_post_ra>
// kernel: tpu_custom_call.1
= control target key start
LH: loop header
LB: loop body
LE: loop exit
PB: predicated region body
PF: predicated region fallthrough
CT: control target
= control target key end

     0   :  { %vm14_vm0 = vcmask 64512   ;;  %v27_v8 = vlaneseq  ;;  %vm105_vm1 = vcmask 7168   ;;  %s193_s0 = inlined_call_operand.vmem [shape: f32[32,8], index: 0, kind: input, shape index: {}]   ;;  %s194_s1 = inlined_call_operand.vmem [shape: f32[32,1], index: 1, kind: output, shape index: {0}]   ;;  %s195_s2 = inlined_call_operand.vmem [shape: f32[32,1], index: 2, kind: output, shape index: {1}]  }
   0x1   :  { %v10_v0 = vld [vmem:[%s193_s0] sm:$0xff]  ;;  %v12_v1 = vld [vmem:[%s193_s0 + $0x10] sm:$0xff]  ;;  %v11_v2 = vld [vmem:[%s193_s0 + $0x8] sm:$0xff] }
   0x2   :  { %v15_v3 = vsel %vm14_vm0, %v10_v0, -inf  ;;  %v21_v4 = vsel %vm14_vm0, %v12_v1, -inf  ;;  %v13_v5 = vld [vmem:[%s193_s0 + $0x18] sm:$0xff]  ;;  %v18_v6 = vsel %vm14_vm0, %v11_v2, -inf  ;;  %v28_v9 = vand.u32 127, %v27_v8 }
   0x3   :  { %16 = vmax.xlane.f32.xlu0 %v15_v3  ;;  %22 = vmax.xlane.f32.xlu1 %v21_v4  ;;  %v24_v7 = vsel %vm14_vm0, %v13_v5, -inf  ;;  %vm33_vm2 = vcmp.ne.f32.partialorder %v10_v0, %v10_v0  ;;  %vm35_vm3 = vcmp.ne.f32.partialorder %v12_v1, %v12_v1  ;;  %vm34_vm8 = vcmp.ne.f32.partialorder %v11_v2, %v11_v2 }
   0x4   :  { %vm36_vm9 = vcmp.ne.f32.partialorder %v13_v5, %v13_v5 }
   0x7   :  { %19 = vmax.xlane.f32.xlu0 %v18_v6  ;;  %25 = vmax.xlane.f32.xlu1 %v24_v7 }
  0x90   :  { %v17_v10 = vpop.xlane.xlu0 %16  ;;  %v23_v11 = vpop.xlane.xlu1 %22 }
  0x91   :  { %vm29_vm4 = vcmp.eq.f32.partialorder %v10_v0, %v17_v10  ;;  %106 = vst.msk [vmem:[%s194_s1] sm:$0xff] %vm105_vm1, %v17_v10  ;;  %vm31_vm5 = vcmp.eq.f32.partialorder %v12_v1, %v23_v11  ;;  %108 = vst.msk [vmem:[%s194_s1 + $0x10] sm:$0xff] %vm105_vm1, %v23_v11 }
  0x92   :  { %vm37_vm6 = vmor %vm29_vm4, %vm33_vm2 }
  0x93   :  { %v41_v12 = vsel %vm37_vm6, %v28_v9, 2147483647  ;;  %vm39_vm7 = vmor %vm31_vm5, %vm35_vm3 }
  0x94   :  { %v43_v13 = vsel %vm39_vm7, %v28_v9, 2147483647  ;;  %v20_v14 = vpop.xlane.xlu0 %19  ;;  %v26_v15 = vpop.xlane.xlu1 %25  ;;  %v45_v16 = vsel %vm14_vm0, %v41_v12, 2147483647 }
  0x95   :  { %vm30_vm10 = vcmp.eq.f32.partialorder %v11_v2, %v20_v14  ;;  %107 = vst.msk [vmem:[%s194_s1 + $0x8] sm:$0xff] %vm105_vm1, %v20_v14  ;;  %vm32_vm11 = vcmp.eq.f32.partialorder %v13_v5, %v26_v15  ;;  %109 = vst.msk [vmem:[%s194_s1 + $0x18] sm:$0xff] %vm105_vm1, %v26_v15  ;;  %v47_v17 = vshra.s32 %v45_v16, 16  ;;  %v75_v18 = vsel %vm14_vm0, %v43_v13, 2147483647 }
  0x96   :  { %vm38_vm12 = vmor %vm30_vm10, %vm34_vm8  ;;  %v77_v19 = vshra.s32 %v75_v18, 16  ;;  %v46_v30 = vand.u32 65535, %v45_v16  ;;  %v76_v34 = vand.u32 65535, %v75_v18 }
  0x97   :  { %v42_v20 = vsel %vm38_vm12, %v28_v9, 2147483647  ;;  %vm40_vm13 = vmor %vm32_vm11, %vm36_vm9  ;;  %v49_v21 = vcvt.s32.f32 %v47_v17 }
  0x98   :  { %v44_v22 = vsel %vm40_vm13, %v28_v9, 2147483647  ;;  %v60_v23 = vsel %vm14_vm0, %v42_v20, 2147483647  ;;  %v79_v24 = vcvt.s32.f32 %v77_v19  ;;  %v48_v32 = vcvt.s32.f32 %v46_v30 }
  0x99   :  { %50 = vmin.xlane.f32.xlu0 %v49_v21  ;;  %v62_v25 = vshra.s32 %v60_v23, 16  ;;  %v90_v26 = vsel %vm14_vm0, %v44_v22, 2147483647  ;;  %v61_v33 = vand.u32 65535, %v60_v23  ;;  %v78_v39 = vcvt.s32.f32 %v76_v34 }
  0x9a   :  { %v92_v27 = vshra.s32 %v90_v26, 16  ;;  %v91_v40 = vand.u32 65535, %v90_v26 }
  0x9b   :  { %v64_v28 = vcvt.s32.f32 %v62_v25  ;;  %v63_v38 = vcvt.s32.f32 %v61_v33 }
  0x9c   :  { %v94_v29 = vcvt.s32.f32 %v92_v27  ;;  %v93_v44 = vcvt.s32.f32 %v91_v40 }
  0x9d   :  { %80 = vmin.xlane.f32.xlu0 %v79_v24  ;;  %65 = vmin.xlane.f32.xlu1 %v64_v28 }
  0xa1   :  { %95 = vmin.xlane.f32.xlu1 %v94_v29 }
 0x126   :  { %v51_v31 = vpop.xlane.xlu0 %50 }
 0x127   :  { %vm52_vm14 = vcmp.eq.f32.partialorder %v49_v21, %v51_v31  ;;  %v57_v46 = vcvt.f32.s32 %v51_v31 }
 0x128   :  { %v53_v35 = vsel %vm52_vm14, %v48_v32, inf }
 0x129   :  { %54 = vmin.xlane.f32.xlu0 %v53_v35  ;;  %v58_v50 = vshll.u32 %v57_v46, 16 }
 0x12a   :  { %v66_v36 = vpop.xlane.xlu1 %65  ;;  %v81_v37 = vpop.xlane.xlu0 %80 }
 0x12b   :  { %vm67_vm15 = vcmp.eq.f32.partialorder %v64_v28, %v66_v36  ;;  %vm82_vm0 = vcmp.eq.f32.partialorder %v79_v24, %v81_v37  ;;  %v72_v47 = vcvt.f32.s32 %v66_v36  ;;  %v87_v48 = vcvt.f32.s32 %v81_v37 }
 0x12c   :  { %v68_v41 = vsel %vm67_vm15, %v63_v38, inf  ;;  %v83_v42 = vsel %vm82_vm0, %v78_v39, inf }
 0x12d   :  { %69 = vmin.xlane.f32.xlu1 %v68_v41  ;;  %84 = vmin.xlane.f32.xlu0 %v83_v42  ;;  %v73_v53 = vshll.u32 %v72_v47, 16  ;;  %v88_v54 = vshll.u32 %v87_v48, 16 }
 0x12e   :  { %v96_v43 = vpop.xlane.xlu1 %95 }
 0x12f   :  { %vm97_vm2 = vcmp.eq.f32.partialorder %v94_v29, %v96_v43  ;;  %v102_v57 = vcvt.f32.s32 %v96_v43 }
 0x130   :  { %v98_v45 = vsel %vm97_vm2, %v93_v44, inf }
 0x131   :  { %99 = vmin.xlane.f32.xlu1 %v98_v45  ;;  %v103_v0 = vshll.u32 %v102_v57, 16 }
 0x1b6   :  { %v55_v49 = vpop.xlane.xlu0 %54 }
 0x1b7   :  { %v56_v51 = vcvt.f32.s32 %v55_v49 }
 0x1b9   :  { %v59_v52 = vadd.s32 %v58_v50, %v56_v51 }
 0x1ba   :  { %v70_v55 = vpop.xlane.xlu1 %69  ;;  %v85_v56 = vpop.xlane.xlu0 %84 }
 0x1bb   :  { %v110_v58 = vcvt.s32.f32 %v59_v52  ;;  %v71_v59 = vcvt.f32.s32 %v70_v55  ;;  %v86_v60 = vcvt.f32.s32 %v85_v56 }
 0x1bd   :  { %114 = vst.msk [vmem:[%s195_s2] sm:$0xff] %vm105_vm1, %v110_v58  ;;  %v74_v61 = vadd.s32 %v73_v53, %v71_v59  ;;  %v89_v62 = vadd.s32 %v88_v54, %v86_v60 }
 0x1be   :  { %v100_v63 = vpop.xlane.xlu1 %99 }
 0x1bf   :  { %v111_v1 = vcvt.s32.f32 %v74_v61  ;;  %v112_v2 = vcvt.s32.f32 %v89_v62  ;;  %v101_v3 = vcvt.f32.s32 %v100_v63 }
 0x1c1   :  { %115 = vst.msk [vmem:[%s195_s2 + $0x8] sm:$0xff] %vm105_vm1, %v111_v1  ;;  %116 = vst.msk [vmem:[%s195_s2 + $0x10] sm:$0xff] %vm105_vm1, %v112_v2  ;;  %v104_v4 = vadd.s32 %v103_v0, %v101_v3 }
 0x1c3   :  { %v113_v5 = vcvt.s32.f32 %v104_v4 }
 0x1c5   :  { %117 = vst.msk [vmem:[%s195_s2 + $0x18] sm:$0xff] %vm105_vm1, %v113_v5 }

</bundles_post_ra>
